<compile_context>
chip_gen: v7x
topology: tpu7x:2x2x1
jax: 0.10.0
libtpu: 0.0.40
codegen_flags: <defaults>
</compile_context>

<pallas_src>
import functools
import math

import jax
import jax.numpy as jnp
from jax.experimental import pallas as pl
from jax.experimental.pallas import tpu as pltpu

_LANE = 128
_TILE_CANDIDATES = (2048, 1024, 512, 256, 128)


def _adv_classifier_kernel(*refs, num_layers, act_dtype):
    """One batch tile of the AdversarialClassifier forward pass.

    refs = (mu_ref, w1, b1, ..., wL, bL, out_ref)
      mu_ref : [TB, latent_dim]                 (f32 or bf16; batch on sublanes)
      wi     : [out_i, in_i]  PyTorch layout    (f32 or bf16)
      bi     : [out_i, 1]                       (f32)
      out_ref: [num_pats, TB]                   (f32; batch on lanes)
    """
    mu_ref, out_ref = refs[0], refs[-1]
    wb = refs[1:-1]

    # GradientReversal: identity in forward.  Dropout: identity at inference.
    # TODO(synk): GRL gradient flip / dropout masks are training-time only and
    # are not represented in this inference kernel.
    x = mu_ref[...]                              # [TB, L]

    for li in range(num_layers):
        w = wb[2 * li][...]                      # [out_i, in_i]
        b = wb[2 * li + 1][...]                  # [out_i, 1]  (f32)
        if li == 0:
            # [out0, L] x [TB, L] -> [out0, TB]: contract the last dim of both
            # operands so mu is consumed in its natural layout and the batch
            # lands on the lane axis of the result.
            y = jax.lax.dot_general(
                w, x.astype(w.dtype),
                dimension_numbers=(((1,), (1,)), ((), ())),
                preferred_element_type=jnp.float32)
        else:
            # [out_i, in_i] x [in_i, TB] -> [out_i, TB]
            y = jnp.dot(w, x.astype(w.dtype),
                        preferred_element_type=jnp.float32)
        y = y + b                                # f32 bias add
        if li < num_layers - 1:
            ya = y.astype(act_dtype)
            x = ya * jax.nn.sigmoid(ya)          # SiLU
        else:
            # Numerically stable softmax over the class (sublane) axis, f32.
            m = jnp.max(y, axis=0, keepdims=True)
            e = jnp.exp(y - m)
            s = jnp.sum(e, axis=0, keepdims=True)
            out_ref[...] = (e * pl.reciprocal(s, approx=True)).astype(out_ref.dtype)


def _choose_tiling(batch):
    """Return (padded_batch, batch_tile) for the batch-on-lanes layout.

    Lane-blocked tiles must be multiples of 128; prefer the largest candidate
    that still leaves >= 2 grid steps so v7x megacore can split the grid.
    """
    if batch < 2 * _LANE:
        # Too small to split along lanes: one full-extent tile.
        return batch, batch
    padded = -(-batch // _LANE) * _LANE
    for cand in _TILE_CANDIDATES:
        if padded % cand == 0 and padded // cand >= 2:
            return padded, cand
    return padded, _LANE  # unreachable in practice


def prepare_params(params, compute_dtype=jnp.float32):
    """Cast weights (PyTorch [out, in] layout) to the matmul dtype and reshape
    biases to [out, 1] once.  Use bf16 on v6e/v7x; keep f32 on v5e."""
    return [(w.astype(compute_dtype), b.reshape(-1, 1).astype(jnp.float32))
            for w, b in params]


def _vmem_budget(prepared_params, tb, latent_dim, num_pats, mu_itemsize):
    weight_bytes = sum(w.size * w.dtype.itemsize + b.size * b.dtype.itemsize
                       for w, b in prepared_params)
    widest = max([latent_dim, num_pats] + [w.shape[0] for w, _ in prepared_params])
    act_bytes = 4 * widest * tb * 4                                # f32 activation slabs
    io_bytes = 2 * tb * (latent_dim * mu_itemsize + num_pats * 4)  # double-buffered I/O
    need = 2 * (weight_bytes + act_bytes + io_bytes)               # headroom
    try:
        phys = pltpu.get_tpu_info().vmem_capacity_bytes
    except Exception:
        phys = 64 * 1024 * 1024
    cap = int(phys * 3 // 4)   # leave room for compiler scratch (v7x: 64 MiB physical)
    return int(min(max(need, 4 * 1024 * 1024), cap))


def adversarial_classifier_forward(mu, alpha, prepared_params, *,
                                   batch_tile=None, act_dtype=None,
                                   vmem_limit_bytes=None):
    """mu: [B, latent_dim] -> class probabilities [B, num_pats]."""
    del alpha  # GradientReversal scaling only affects the backward pass.
    B, L = mu.shape
    num_layers = len(prepared_params)
    num_pats = prepared_params[-1][0].shape[0]
    compute_dtype = prepared_params[0][0].dtype
    if act_dtype is None:
        # bf16 activations when the matmuls are bf16 (v6e/v7x); f32 otherwise.
        act_dtype = compute_dtype

    if batch_tile is None:
        B_pad, TB = _choose_tiling(B)
    else:
        TB = int(batch_tile)
        B_pad = pl.cdiv(B, TB) * TB

    # Stream mu in the matmul dtype (halves the dominant HBM read when bf16);
    # pad awkward batch sizes so the grid stays multi-step and pipelined.
    mu_in = mu.astype(compute_dtype)
    if B_pad != B:
        mu_in = jnp.pad(mu_in, ((0, B_pad - B), (0, 0)))

    grid = (B_pad // TB,)

    in_specs = [pl.BlockSpec((TB, L), lambda i: (i, 0))]
    flat_args = [mu_in]
    for w, b in prepared_params:
        # Same block every grid step -> weights/biases stay VMEM-resident.
        # (Could also be pinned single-buffered; at ~26 KB it is negligible.)
        in_specs.append(pl.BlockSpec(w.shape, lambda i: (0, 0)))
        in_specs.append(pl.BlockSpec(b.shape, lambda i: (0, 0)))
        flat_args.extend([w, b])

    out_specs = pl.BlockSpec((num_pats, TB), lambda i: (0, i))

    if vmem_limit_bytes is None:
        vmem_limit_bytes = _vmem_budget(prepared_params, TB, L, num_pats,
                                        jnp.dtype(compute_dtype).itemsize)

    kernel = functools.partial(_adv_classifier_kernel,
                               num_layers=num_layers, act_dtype=act_dtype)
    out_t = pl.pallas_call(
        kernel,
        out_shape=jax.ShapeDtypeStruct((num_pats, B_pad), jnp.float32),
        grid=grid,
        in_specs=in_specs,
        out_specs=out_specs,
        compiler_params=pltpu.CompilerParams(
            dimension_semantics=("parallel",),
            vmem_limit_bytes=int(vmem_limit_bytes)),
    )(*flat_args)

    # Layout plumbing only: probabilities come out lane-dense as
    # [num_pats, B_pad]; present them as [B, num_pats] per the module contract.
    return out_t[:, :B].T


def init_params(key, latent_dim, hidden_dims, num_pats):
    """Synthetic init mimicking nn.Linear's U(-1/sqrt(fan_in), 1/sqrt(fan_in)).

    Weights are stored in PyTorch-native [out_features, in_features] layout.
    """
    dims = [latent_dim] + list(hidden_dims) + [num_pats]
    keys = jax.random.split(key, 2 * (len(dims) - 1))
    params = []
    for i in range(len(dims) - 1):
        fan_in, fan_out = dims[i], dims[i + 1]
        bound = 1.0 / math.sqrt(fan_in)
        w = jax.random.uniform(keys[2 * i], (fan_out, fan_in), jnp.float32,
                               -bound, bound)
        b = jax.random.uniform(keys[2 * i + 1], (fan_out,), jnp.float32,
                               -bound, bound)
        params.append((w, b))
    return params


def _reference(mu, params):
    """Plain-JAX reference mirroring the PyTorch forward (eval mode)."""
    x = mu
    for i, (w, b) in enumerate(params):
        x = x @ w.T + b
        if i < len(params) - 1:
            x = x * jax.nn.sigmoid(x)
    return jax.nn.softmax(x, axis=1)


if __name__ == "__main__":
    latent_dim = 32
    hidden_dims = [64, 64]
    num_pats = 4
    alpha = 1.0

    key = jax.random.PRNGKey(0)
    k_small, k_big, k_p = jax.random.split(key, 3)
    params = init_params(k_p, latent_dim, hidden_dims, num_pats)
    p_f32 = prepare_params(params, jnp.float32)

    # --- small batch (single full-extent tile), f32 matmuls ---
    mu_small = jax.random.normal(k_small, (2, latent_dim), jnp.float32)
    out = jax.block_until_ready(
        adversarial_classifier_forward(mu_small, alpha, p_f32))
    ref = _reference(mu_small, params)
    assert out.shape == (2, num_pats), out.shape
    assert jnp.allclose(out, ref, atol=2e-3, rtol=2e-3), \
        float(jnp.max(jnp.abs(out - ref)))

    # --- batch exercising the padded, multi-step, lane-blocked grid (B=300 ->
    #     padded to 384, tile=128, 3 parallel steps) ---
    mu_big = jax.random.normal(k_big, (300, latent_dim), jnp.float32)
    out_big = jax.block_until_ready(
        adversarial_classifier_forward(mu_big, alpha, p_f32))
    ref_big = _reference(mu_big, params)
    assert out_big.shape == (300, num_pats), out_big.shape
    assert jnp.allclose(out_big, ref_big, atol=2e-3, rtol=2e-3), \
        float(jnp.max(jnp.abs(out_big - ref_big)))

    # --- bf16 streaming / matmul / activation path (v6e/v7x MXU-native);
    #     softmax stays f32 ---
    p_bf16 = prepare_params(params, jnp.bfloat16)
    out_bf16 = jax.block_until_ready(
        adversarial_classifier_forward(mu_big, alpha, p_bf16))
    assert jnp.allclose(out_bf16, ref_big, atol=2e-2, rtol=2e-2), \
        float(jnp.max(jnp.abs(out_bf16 - ref_big)))

    print("KERNEL_OK")
</pallas_src>

<mosaic_0001>
module attributes {stable_mosaic.version = 11 : i64} {
  func.func @_adv_classifier_kernel(%arg0: i32, %arg1: memref<2x32xf32, #tpu.memory_space<vmem>>, %arg2: memref<64x32xf32, #tpu.memory_space<vmem>>, %arg3: memref<64x1xf32, #tpu.memory_space<vmem>>, %arg4: memref<64x64xf32, #tpu.memory_space<vmem>>, %arg5: memref<64x1xf32, #tpu.memory_space<vmem>>, %arg6: memref<4x64xf32, #tpu.memory_space<vmem>>, %arg7: memref<4x1xf32, #tpu.memory_space<vmem>>, %arg8: memref<4x2xf32, #tpu.memory_space<vmem>>) attributes {dimension_semantics = [#tpu.dimension_semantics<parallel>], iteration_bounds = array<i64: 1>, scalar_prefetch = 0 : i64, scratch_operands = 0 : i64, tpu.core_type = #tpu.core_type<tc>, window_params = [{transform_indices = @transform_0, window_bounds = array<i64: 2, 32>}, {pipeline_mode = #tpu.pipeline_mode<synchronous>, transform_indices = @transform_1, window_bounds = array<i64: 64, 32>}, {pipeline_mode = #tpu.pipeline_mode<synchronous>, transform_indices = @transform_2, window_bounds = array<i64: 64, 1>}, {pipeline_mode = #tpu.pipeline_mode<synchronous>, transform_indices = @transform_3, window_bounds = array<i64: 64, 64>}, {pipeline_mode = #tpu.pipeline_mode<synchronous>, transform_indices = @transform_4, window_bounds = array<i64: 64, 1>}, {pipeline_mode = #tpu.pipeline_mode<synchronous>, transform_indices = @transform_5, window_bounds = array<i64: 4, 64>}, {pipeline_mode = #tpu.pipeline_mode<synchronous>, transform_indices = @transform_6, window_bounds = array<i64: 4, 1>}, {transform_indices = @transform_7, window_bounds = array<i64: 4, 2>}]} {
    %c0 = arith.constant 0 : index
    %c0_0 = arith.constant 0 : index
    %0 = vector.load %arg1[%c0, %c0_0] : memref<2x32xf32, #tpu.memory_space<vmem>>, vector<2x32xf32>
    %c0_1 = arith.constant 0 : index
    %c0_2 = arith.constant 0 : index
    %1 = vector.load %arg2[%c0_1, %c0_2] : memref<64x32xf32, #tpu.memory_space<vmem>>, vector<64x32xf32>
    %c0_3 = arith.constant 0 : index
    %c0_4 = arith.constant 0 : index
    %2 = vector.load %arg3[%c0_3, %c0_4] : memref<64x1xf32, #tpu.memory_space<vmem>>, vector<64x1xf32>
    %cst = arith.constant dense<0.000000e+00> : vector<64x2xf32>
    %3 = tpu.matmul %1, %0, %cst {dimension_numbers = #tpu.dot_dimension_numbers<[1], [1], [0], [0], [0, 0, 1, 0], [], []>} : vector<64x32xf32>, vector<2x32xf32>, vector<64x2xf32> -> vector<64x2xf32>
    %4 = vector.broadcast %2 : vector<64x1xf32> to vector<64x2xf32>
    %5 = arith.addf %3, %4 : vector<64x2xf32>
    %6 = arith.negf %5 : vector<64x2xf32>
    %7 = math.exp %6 : vector<64x2xf32>
    %cst_5 = arith.constant 1.000000e+00 : f32
    %8 = vector.broadcast %cst_5 : f32 to vector<64x2xf32>
    %9 = arith.addf %8, %7 : vector<64x2xf32>
    %10 = arith.divf %8, %9 : vector<64x2xf32>
    %11 = arith.mulf %5, %10 : vector<64x2xf32>
    %c0_6 = arith.constant 0 : index
    %c0_7 = arith.constant 0 : index
    %12 = vector.load %arg4[%c0_6, %c0_7] : memref<64x64xf32, #tpu.memory_space<vmem>>, vector<64x64xf32>
    %c0_8 = arith.constant 0 : index
    %c0_9 = arith.constant 0 : index
    %13 = vector.load %arg5[%c0_8, %c0_9] : memref<64x1xf32, #tpu.memory_space<vmem>>, vector<64x1xf32>
    %cst_10 = arith.constant dense<0.000000e+00> : vector<64x2xf32>
    %14 = tpu.matmul %12, %11, %cst_10 {dimension_numbers = #tpu.dot_dimension_numbers<[1], [0], [0], [1], [0, 0, 1, 1], [], []>} : vector<64x64xf32>, vector<64x2xf32>, vector<64x2xf32> -> vector<64x2xf32>
    %15 = vector.broadcast %13 : vector<64x1xf32> to vector<64x2xf32>
    %16 = arith.addf %14, %15 : vector<64x2xf32>
    %17 = arith.negf %16 : vector<64x2xf32>
    %18 = math.exp %17 : vector<64x2xf32>
    %cst_11 = arith.constant 1.000000e+00 : f32
    %19 = vector.broadcast %cst_11 : f32 to vector<64x2xf32>
    %20 = arith.addf %19, %18 : vector<64x2xf32>
    %21 = arith.divf %19, %20 : vector<64x2xf32>
    %22 = arith.mulf %16, %21 : vector<64x2xf32>
    %c0_12 = arith.constant 0 : index
    %c0_13 = arith.constant 0 : index
    %23 = vector.load %arg6[%c0_12, %c0_13] : memref<4x64xf32, #tpu.memory_space<vmem>>, vector<4x64xf32>
    %c0_14 = arith.constant 0 : index
    %c0_15 = arith.constant 0 : index
    %24 = vector.load %arg7[%c0_14, %c0_15] : memref<4x1xf32, #tpu.memory_space<vmem>>, vector<4x1xf32>
    %cst_16 = arith.constant dense<0.000000e+00> : vector<4x2xf32>
    %25 = tpu.matmul %23, %22, %cst_16 {dimension_numbers = #tpu.dot_dimension_numbers<[1], [0], [0], [1], [0, 0, 1, 1], [], []>} : vector<4x64xf32>, vector<64x2xf32>, vector<4x2xf32> -> vector<4x2xf32>
    %26 = vector.broadcast %24 : vector<4x1xf32> to vector<4x2xf32>
    %27 = arith.addf %25, %26 : vector<4x2xf32>
    %cst_17 = arith.constant dense<0xFF800000> : vector<2xf32>
    %28 = vector.multi_reduction <maximumf>, %27, %cst_17 [0] : vector<4x2xf32> to vector<2xf32>
    %29 = vector.shape_cast %28 : vector<2xf32> to vector<1x2xf32>
    %30 = vector.broadcast %29 : vector<1x2xf32> to vector<4x2xf32>
    %31 = arith.subf %27, %30 : vector<4x2xf32>
    %32 = math.exp %31 : vector<4x2xf32>
    %cst_18 = arith.constant dense<0.000000e+00> : vector<2xf32>
    %33 = vector.multi_reduction <add>, %32, %cst_18 [0] : vector<4x2xf32> to vector<2xf32>
    %34 = vector.shape_cast %33 : vector<2xf32> to vector<1x2xf32>
    %35 = tpu.reciprocal %34 {approx = true} : vector<1x2xf32> -> vector<1x2xf32>
    %36 = vector.broadcast %35 : vector<1x2xf32> to vector<4x2xf32>
    %37 = arith.mulf %32, %36 : vector<4x2xf32>
    %c0_19 = arith.constant 0 : index
    %c0_20 = arith.constant 0 : index
    %38 = vector.load %arg8[%c0_19, %c0_20] : memref<4x2xf32, #tpu.memory_space<vmem>>, vector<4x2xf32>
    tpu.vector_store %arg8[%c0_19, %c0_20], %37 {strides = array<i32>} : memref<4x2xf32, #tpu.memory_space<vmem>>, vector<4x2xf32>,
    return
  }
  func.func @transform_0(%arg0: i32) -> (i32, i32) {
    %c0_i32 = arith.constant 0 : i32
    %c0_i32_0 = arith.constant 0 : i32
    return %arg0, %c0_i32 : i32, i32
  }
  func.func @transform_1(%arg0: i32) -> (i32, i32) {
    %c0_i32 = arith.constant 0 : i32
    %c0_i32_0 = arith.constant 0 : i32
    %c0_i32_1 = arith.constant 0 : i32
    return %c0_i32, %c0_i32_0 : i32, i32
  }
  func.func @transform_2(%arg0: i32) -> (i32, i32) {
    %c0_i32 = arith.constant 0 : i32
    %c0_i32_0 = arith.constant 0 : i32
    %c0_i32_1 = arith.constant 0 : i32
    return %c0_i32, %c0_i32_0 : i32, i32
  }
  func.func @transform_3(%arg0: i32) -> (i32, i32) {
    %c0_i32 = arith.constant 0 : i32
    %c0_i32_0 = arith.constant 0 : i32
    %c0_i32_1 = arith.constant 0 : i32
    return %c0_i32, %c0_i32_0 : i32, i32
  }
  func.func @transform_4(%arg0: i32) -> (i32, i32) {
    %c0_i32 = arith.constant 0 : i32
    %c0_i32_0 = arith.constant 0 : i32
    %c0_i32_1 = arith.constant 0 : i32
    return %c0_i32, %c0_i32_0 : i32, i32
  }
  func.func @transform_5(%arg0: i32) -> (i32, i32) {
    %c0_i32 = arith.constant 0 : i32
    %c0_i32_0 = arith.constant 0 : i32
    %c0_i32_1 = arith.constant 0 : i32
    return %c0_i32, %c0_i32_0 : i32, i32
  }
  func.func @transform_6(%arg0: i32) -> (i32, i32) {
    %c0_i32 = arith.constant 0 : i32
    %c0_i32_0 = arith.constant 0 : i32
    %c0_i32_1 = arith.constant 0 : i32
    return %c0_i32, %c0_i32_0 : i32, i32
  }
  func.func @transform_7(%arg0: i32) -> (i32, i32) {
    %c0_i32 = arith.constant 0 : i32
    %c0_i32_0 = arith.constant 0 : i32
    return %c0_i32, %arg0 : i32, i32
  }
}

</mosaic_0001>

<bundles_post_ra>
// kernel: tpu_custom_call.1
= control target key start
LH: loop header
LB: loop body
LE: loop exit
PB: predicated region body
PF: predicated region fallthrough
CT: control target
= control target key end

     0   :  { %vm83_vm0 = vcmask 261120   ;;  %v850_v2 = vmov 0   ;;  %vm328_vm1 = vcmask 523264   ;;  %vm852_vm2 = vmmov 0   ;;  %s1028_s0 = inlined_call_operand.vmem [shape: f32[2,32], index: 0, kind: input, shape index: {}]   ;;  %s1029_s1 = inlined_call_operand.vmem [shape: f32[64,32], index: 1, kind: input, shape index: {}]   ;;  %s1030_s2 = inlined_call_operand.vmem [shape: f32[64,1], index: 2, kind: input, shape index: {}]   ;;  %s1031_s4 = inlined_call_operand.vmem [shape: f32[64,1], index: 4, kind: input, shape index: {}]   ;;  %s1032_s6 = inlined_call_operand.vmem [shape: f32[4,1], index: 6, kind: input, shape index: {}]   ;;  %s1033_s3 = inlined_call_operand.vmem [shape: f32[64,64], index: 3, kind: input, shape index: {}]   ;;  %s1034_s5 = inlined_call_operand.vmem [shape: f32[4,64], index: 5, kind: input, shape index: {}]   ;;  %s1035_s7 = inlined_call_operand.vmem [shape: f32[4,2], index: 7, kind: output, shape index: {}]  }
   0x1   :  { %v26_v0 = vld [vmem:[%s1028_s0] sm:$0x3]  ;;  %780 = vset.pattern.permute.xlu0 %v850_v2  ;;  %781 = vset.pattern.permute.xlu1 %v850_v2  ;;  %v28_v3 = vld [vmem:[%s1029_s1 + $0x8] sm:$0xff]  ;;  %v29_v4 = vld [vmem:[%s1029_s1 + $0x10] sm:$0xff]  ;;  %vm594_vm3 = vcmask 11264  }
   0x2   :  { %v27_v1 = vld [vmem:[%s1029_s1] sm:$0xff]  ;;  %687 = vmatprep.subr.msk.mxu0 %vm83_vm0, %v26_v0  ;;  %v37_v6 = vld [vmem:[%s1030_s2 + $0x10] sm:$0xff]  ;;  %v36_v7 = vld [vmem:[%s1030_s2 + $0x8] sm:$0xff] }
   0x3   :  { %689 = vmatprep.mubr.msk.f32.mxu0 %vm83_vm0, %v27_v1  ;;  %688 = vmatpush3.xpose.msk.msra.mxu0 %vm83_vm0, %v26_v0  ;;  %v35_v5 = vld [vmem:[%s1030_s2] sm:$0xff]  ;;  %v38_v8 = vld [vmem:[%s1030_s2 + $0x18] sm:$0xff]  ;;  %v40_v12 = vld [vmem:[%s1030_s2 + $0x28] sm:$0xff] }
   0x4   :  { %45 = vperm.xlu0 %780, %v35_v5   ;;  %55 = vperm.xlu1 %781, %v37_v6   ;;  %v30_v9 = vld [vmem:[%s1029_s1 + $0x18] sm:$0xff]  ;;  %v31_v10 = vld [vmem:[%s1029_s1 + $0x20] sm:$0xff]  ;;  %v32_v13 = vld [vmem:[%s1029_s1 + $0x28] sm:$0xff] }
   0x5   :  { %v39_v11 = vld [vmem:[%s1030_s2 + $0x20] sm:$0xff]  ;;  %v33_v14 = vld [vmem:[%s1029_s1 + $0x30] sm:$0xff]  ;;  %v42_v16 = vld [vmem:[%s1030_s2 + $0x38] sm:$0xff] }
   0x6   :  { %690 = vmatmul.mubr.msk.f32.vlgmr.msra.gmra.mrb[0].mxu0 %vm83_vm0, %v28_v3  ;;  %v41_v15 = vld [vmem:[%s1030_s2 + $0x30] sm:$0xff]  ;;  %v34_v17 = vld [vmem:[%s1029_s1 + $0x38] sm:$0xff]  ;;  %v280_v18 = vld [vmem:[%s1031_s4] sm:$0xff] }
   0x7   :  { %692 = vmatprep.mubr.msk.f32.mxu0 %vm83_vm0, %v29_v4  ;;  %v281_v19 = vld [vmem:[%s1031_s4 + $0x8] sm:$0xff]  ;;  %v282_v20 = vld [vmem:[%s1031_s4 + $0x10] sm:$0xff]  ;;  %v283_v21 = vld [vmem:[%s1031_s4 + $0x18] sm:$0xff] }
   0x8   :  { %50 = vperm.xlu0 %780, %v36_v7   ;;  %60 = vperm.xlu1 %781, %v38_v8   ;;  %v284_v22 = vld [vmem:[%s1031_s4 + $0x20] sm:$0xff]  ;;  %v285_v23 = vld [vmem:[%s1031_s4 + $0x28] sm:$0xff]  ;;  %v286_v24 = vld [vmem:[%s1031_s4 + $0x30] sm:$0xff] }
   0x9   :  { %v287_v25 = vld [vmem:[%s1031_s4 + $0x38] sm:$0xff]  ;;  %v515_v26 = vld [vmem:[%s1032_s6] sm:$0xf] }
   0xa   :  { %693 = vmatmul.mubr.msk.f32.gmra.mrb[2].mxu0 %vm83_vm0, %v30_v9  ;;  %v272_v27 = vld [vmem:[%s1033_s3] sm:$0xff] }
   0xb   :  { %695 = vmatprep.mubr.msk.f32.mxu0 %vm83_vm0, %v31_v10  ;;  %717 = vmatprep.mubr.msk.f32.mxu1 %vm328_vm1, %v272_v27 }
   0xc   :  { %65 = vperm.xlu0 %780, %v39_v11   ;;  %70 = vperm.xlu1 %781, %v40_v12  }
   0xe   :  { %696 = vmatmul.mubr.msk.f32.gmra.mrb[4].mxu0 %vm83_vm0, %v32_v13 }
   0xf   :  { %698 = vmatprep.mubr.msk.f32.mxu0 %vm83_vm0, %v33_v14 }
  0x10   :  { %75 = vperm.xlu0 %780, %v41_v15   ;;  %80 = vperm.xlu1 %781, %v42_v16  }
  0x12   :  { %699 = vmatmul.mubr.msk.f32.gmra.mrb[6].mxu0 %vm83_vm0, %v34_v17 }
  0x14   :  { %290 = vperm.xlu0 %780, %v280_v18   ;;  %295 = vperm.xlu1 %781, %v281_v19  }
  0x18   :  { %300 = vperm.xlu0 %780, %v282_v20   ;;  %305 = vperm.xlu1 %781, %v283_v21  }
  0x1c   :  { %310 = vperm.xlu0 %780, %v284_v22   ;;  %315 = vperm.xlu1 %781, %v285_v23  }
  0x20   :  { %320 = vperm.xlu0 %780, %v286_v24   ;;  %325 = vperm.xlu1 %781, %v287_v25  }
  0x24   :  { %518 = vperm.xlu0 %780, %v515_v26  }
  0x83   :  { %v46_v28 = vpop.permute.xlu0 %45  ;;  %v56_v29 = vpop.permute.xlu1 %55 }
  0x87   :  { %v51_v30 = vpop.permute.xlu0 %50  ;;  %v61_v31 = vpop.permute.xlu1 %60 }
  0x8b   :  { %v71_v41 = vpop.permute.xlu1 %70  ;;  %v66_v43 = vpop.permute.xlu0 %65 }
  0x8f   :  { %v81_v51 = vpop.permute.xlu1 %80  ;;  %v76_v54 = vpop.permute.xlu0 %75 }
  0xd9   :  { %v691_v32 = vpop.f32.mrb[0].mxu0 }
  0xda   :  { %v183_v33 = vadd.f32 %v691_v32, %v51_v30  ;;  %v177_v34 = vpop.f32.mrb[1].mxu0  ;;  %v273_v32 = vld [vmem:[%s1033_s3 + $0x8] sm:$0xff] }
  0xdb   :  { %v178_v35 = vadd.f32 %v177_v34, %v46_v28  ;;  %v275_v34 = vld [vmem:[%s1033_s3 + $0x18] sm:$0xff] }
  0xdc   :  { %v629_v36 = vmul.f32 -1.442695, %v183_v33 }
  0xdd   :  { %v628_v37 = vmul.f32 -1.442695, %v178_v35  ;;  %v694_v38 = vpop.f32.mrb[2].mxu0 }
  0xde   :  { %782 = vpow2.f32 %v629_v36  ;;  %v193_v39 = vadd.f32 %v694_v38, %v61_v31  ;;  %v187_v40 = vpop.f32.mrb[3].mxu0  ;;  %v277_v36 = vld [vmem:[%s1033_s3 + $0x28] sm:$0xff]  ;;  %v279_v38 = vld [vmem:[%s1033_s3 + $0x38] sm:$0xff] }
  0xdf   :  { %784 = vpow2.f32 %v628_v37  ;;  %v188_v42 = vadd.f32 %v187_v40, %v56_v29  ;;  %v278_v37 = vld [vmem:[%s1033_s3 + $0x30] sm:$0xff]  ;;  %v853_v40 = vmov 0.0  }
  0xe0   :  { %v631_v44 = vmul.f32 -1.442695, %v193_v39  ;;  %745 = vmatprep.mubr.msk.f32.mxu0 %vm852_vm2, %v853_v40 }
  0xe1   :  { %v630_v45 = vmul.f32 -1.442695, %v188_v42  ;;  %v697_v46 = vpop.f32.mrb[4].mxu0 }
  0xe2   :  { %786 = vpow2.f32 %v631_v44  ;;  %v203_v47 = vadd.f32 %v697_v46, %v71_v41  ;;  %v197_v48 = vpop.f32.mrb[5].mxu0  ;;  %v296_v41 = vpop.permute.xlu1 %295 }
  0xe3   :  { %788 = vpow2.f32 %v630_v45  ;;  %v198_v49 = vadd.f32 %v197_v48, %v66_v43 }
  0xe4   :  { %v633_v50 = vmul.f32 -1.442695, %v203_v47 }
  0xe5   :  { %v632_v52 = vmul.f32 -1.442695, %v198_v49  ;;  %v700_v53 = vpop.f32.mrb[6].mxu0 }
  0xe6   :  { %790 = vpow2.f32 %v633_v50  ;;  %v213_v55 = vadd.f32 %v700_v53, %v81_v51  ;;  %v207_v56 = vpop.f32.mrb[7].mxu0  ;;  %v306_v43 = vpop.permute.xlu1 %305 }
  0xe7   :  { %792 = vpow2.f32 %v632_v52  ;;  %v208_v57 = vadd.f32 %v207_v56, %v76_v54 }
  0xe8   :  { %v783_v58 = vpop.eup %782  ;;  %v635_v59 = vmul.f32 -1.442695, %v213_v55 }
  0xe9   :  { %v785_v60 = vpop.eup %784  ;;  %v241_v61 = vadd.f32 1.0, %v783_v58  ;;  %v634_v62 = vmul.f32 -1.442695, %v208_v57 }
  0xea   :  { %v240_v63 = vadd.f32 1.0, %v785_v60  ;;  %794 = vpow2.f32 %v635_v59  ;;  %v316_v54 = vpop.permute.xlu1 %315 }
  0xeb   :  { %796 = vrcp.f32 %v241_v61 }
  0xec   :  { %v787_v0 = vpop.eup %786  ;;  %798 = vrcp.f32 %v240_v63 }
  0xed   :  { %v789_v1 = vpop.eup %788  ;;  %v243_v2 = vadd.f32 1.0, %v787_v0  ;;  %800 = vpow2.f32 %v634_v62 }
  0xee   :  { %v242_v3 = vadd.f32 1.0, %v789_v1  ;;  %v326_v0 = vpop.permute.xlu1 %325 }
  0xef   :  { %802 = vrcp.f32 %v243_v2 }
  0xf0   :  { %v791_v4 = vpop.eup %790  ;;  %804 = vrcp.f32 %v242_v3 }
  0xf1   :  { %v793_v5 = vpop.eup %792  ;;  %v245_v6 = vadd.f32 1.0, %v791_v4 }
  0xf2   :  { %v244_v7 = vadd.f32 1.0, %v793_v5 }
  0xf3   :  { %806 = vrcp.f32 %v245_v6 }
  0xf4   :  { %v795_v8 = vpop.eup %794  ;;  %808 = vrcp.f32 %v244_v7 }
  0xf5   :  { %v797_v9 = vpop.eup %796  ;;  %v247_v10 = vadd.f32 1.0, %v795_v8 }
  0xf6   :  { %v799_v11 = vpop.eup %798  ;;  %v265_v12 = vmul.f32 %v797_v9, %v183_v33  ;;  %v274_v33 = vld [vmem:[%s1033_s3 + $0x10] sm:$0xff] }
  0xf7   :  { %v801_v13 = vpop.eup %800  ;;  %v264_v14 = vmul.f32 %v799_v11, %v178_v35  ;;  %810 = vrcp.f32 %v247_v10  ;;  %v276_v35 = vld [vmem:[%s1033_s3 + $0x20] sm:$0xff] }
  0xf8   :  { %v246_v15 = vadd.f32 1.0, %v801_v13 }
  0xf9   :  { %v803_v16 = vpop.eup %802  ;;  %v748_v17 = vpack.c.bf16 %v265_v12, %v264_v14 }
  0xfa   :  { %v805_v18 = vpop.eup %804  ;;  %v267_v19 = vmul.f32 %v803_v16, %v193_v39  ;;  %812 = vrcp.f32 %v246_v15  ;;  %v851_v39 = vmov 0.0|0.0  }
  0xfb   :  { %v266_v20 = vmul.f32 %v805_v18, %v188_v42  ;;  %749 = vmatprep.subr.bf16.mxu1 %v748_v17  ;;  %764 = vmatprep.subr.bf16.mxu0 %v851_v39  ;;  %v291_v42 = vpop.permute.xlu0 %290 }
  0xfc   :  { %751 = vmatpush3.bf16.msra.mxu1 %v748_v17 }
  0xfd   :  { %v807_v21 = vpop.eup %806  ;;  %v752_v22 = vpack.c.bf16 %v267_v19, %v266_v20 }
  0xfe   :  { %v809_v23 = vpop.eup %808  ;;  %v269_v24 = vmul.f32 %v807_v21, %v203_v47 }
  0xff   :  { %v268_v25 = vmul.f32 %v809_v23, %v198_v49  ;;  %753 = vmatprep.subr.bf16.mxu1 %v752_v22  ;;  %v301_v45 = vpop.permute.xlu0 %300 }
 0x100   :  { %755 = vmatpush3.bf16.msra.mxu1 %v752_v22 }
 0x101   :  { %v811_v26 = vpop.eup %810  ;;  %v756_v27 = vpack.c.bf16 %v269_v24, %v268_v25 }
 0x102   :  { %v271_v28 = vmul.f32 %v811_v26, %v213_v55 }
 0x103   :  { %757 = vmatprep.subr.bf16.mxu1 %v756_v27  ;;  %v311_v56 = vpop.permute.xlu0 %310 }
 0x104   :  { %v813_v29 = vpop.eup %812  ;;  %759 = vmatpush3.bf16.msra.mxu1 %v756_v27 }
 0x105   :  { %v270_v30 = vmul.f32 %v813_v29, %v208_v57 }
 0x107   :  { %v760_v31 = vpack.c.bf16 %v271_v28, %v270_v30  ;;  %v321_v3 = vpop.permute.xlu0 %320 }
 0x109   :  { %761 = vmatprep.subr.bf16.mxu1 %v760_v31 }
 0x10a   :  { %763 = vmatpush3.bf16.msra.mxu1 %v760_v31 }
 0x10d   :  { %718 = vmatmul.mubr.msk.f32.vlgmr.msra.gmra.mrb[0].mxu1 %vm328_vm1, %v273_v32 }
 0x10e   :  { %720 = vmatprep.mubr.msk.f32.mxu1 %vm328_vm1, %v274_v33 }
 0x111   :  { %721 = vmatmul.mubr.msk.f32.gmra.mrb[2].mxu1 %vm328_vm1, %v275_v34 }
 0x112   :  { %723 = vmatprep.mubr.msk.f32.mxu1 %vm328_vm1, %v276_v35 }
 0x115   :  { %724 = vmatmul.mubr.msk.f32.gmra.mrb[4].mxu1 %vm328_vm1, %v277_v36 }
 0x116   :  { %726 = vmatprep.mubr.msk.f32.mxu1 %vm328_vm1, %v278_v37 }
 0x119   :  { %727 = vmatmul.mubr.msk.f32.gmra.mrb[6].mxu1 %vm328_vm1, %v279_v38 }
 0x1e0   :  { %v719_v44 = vpop.f32.mrb[0].mxu1 }
 0x1e1   :  { %v425_v46 = vadd.f32 %v719_v44, %v296_v41  ;;  %v419_v47 = vpop.f32.mrb[1].mxu1 }
 0x1e2   :  { %v420_v48 = vadd.f32 %v419_v47, %v291_v42  ;;  %v519_v47 = vpop.permute.xlu0 %518 }
 0x1e3   :  { %v645_v49 = vmul.f32 -1.442695, %v425_v46 }
 0x1e4   :  { %v644_v50 = vmul.f32 -1.442695, %v420_v48  ;;  %v722_v51 = vpop.f32.mrb[2].mxu1 }
 0x1e5   :  { %814 = vpow2.f32 %v645_v49  ;;  %v435_v52 = vadd.f32 %v722_v51, %v306_v43  ;;  %v429_v53 = vpop.f32.mrb[3].mxu1 }
 0x1e6   :  { %816 = vpow2.f32 %v644_v50  ;;  %v430_v55 = vadd.f32 %v429_v53, %v301_v45 }
 0x1e7   :  { %v647_v57 = vmul.f32 -1.442695, %v435_v52 }
 0x1e8   :  { %v646_v58 = vmul.f32 -1.442695, %v430_v55  ;;  %v725_v59 = vpop.f32.mrb[4].mxu1 }
 0x1e9   :  { %818 = vpow2.f32 %v647_v57  ;;  %v445_v60 = vadd.f32 %v725_v59, %v316_v54  ;;  %v439_v61 = vpop.f32.mrb[5].mxu1 }
 0x1ea   :  { %820 = vpow2.f32 %v646_v58  ;;  %v440_v62 = vadd.f32 %v439_v61, %v311_v56 }
 0x1eb   :  { %v649_v63 = vmul.f32 -1.442695, %v445_v60 }
 0x1ec   :  { %v648_v1 = vmul.f32 -1.442695, %v440_v62  ;;  %v728_v2 = vpop.f32.mrb[6].mxu1 }
 0x1ed   :  { %822 = vpow2.f32 %v649_v63  ;;  %v455_v4 = vadd.f32 %v728_v2, %v326_v0  ;;  %v449_v5 = vpop.f32.mrb[7].mxu1 }
 0x1ee   :  { %824 = vpow2.f32 %v648_v1  ;;  %v450_v6 = vadd.f32 %v449_v5, %v321_v3 }
 0x1ef   :  { %v815_v7 = vpop.eup %814  ;;  %v651_v8 = vmul.f32 -1.442695, %v455_v4 }
 0x1f0   :  { %v817_v9 = vpop.eup %816  ;;  %v483_v10 = vadd.f32 1.0, %v815_v7  ;;  %v650_v11 = vmul.f32 -1.442695, %v450_v6 }
 0x1f1   :  { %v482_v12 = vadd.f32 1.0, %v817_v9  ;;  %826 = vpow2.f32 %v651_v8 }
 0x1f2   :  { %828 = vrcp.f32 %v483_v10 }
 0x1f3   :  { %v819_v13 = vpop.eup %818  ;;  %830 = vrcp.f32 %v482_v12 }
 0x1f4   :  { %v821_v14 = vpop.eup %820  ;;  %v485_v15 = vadd.f32 1.0, %v819_v13  ;;  %832 = vpow2.f32 %v650_v11 }
 0x1f5   :  { %v484_v16 = vadd.f32 1.0, %v821_v14 }
 0x1f6   :  { %834 = vrcp.f32 %v485_v15 }
 0x1f7   :  { %v823_v17 = vpop.eup %822  ;;  %836 = vrcp.f32 %v484_v16 }
 0x1f8   :  { %v825_v18 = vpop.eup %824  ;;  %v487_v19 = vadd.f32 1.0, %v823_v17 }
 0x1f9   :  { %v486_v20 = vadd.f32 1.0, %v825_v18 }
 0x1fa   :  { %838 = vrcp.f32 %v487_v19 }
 0x1fb   :  { %v827_v21 = vpop.eup %826  ;;  %840 = vrcp.f32 %v486_v20 }
 0x1fc   :  { %v829_v22 = vpop.eup %828  ;;  %v489_v23 = vadd.f32 1.0, %v827_v21 }
 0x1fd   :  { %v831_v24 = vpop.eup %830  ;;  %v507_v25 = vmul.f32 %v829_v22, %v425_v46  ;;  %v514_v46 = vld [vmem:[%s1034_s5] sm:$0xf] }
 0x1fe   :  { %v833_v26 = vpop.eup %832  ;;  %v506_v27 = vmul.f32 %v831_v24, %v420_v48  ;;  %842 = vrcp.f32 %v489_v23 }
 0x1ff   :  { %v488_v28 = vadd.f32 1.0, %v833_v26 }
 0x200   :  { %v835_v29 = vpop.eup %834  ;;  %v765_v30 = vpack.c.bf16 %v507_v25, %v506_v27 }
 0x201   :  { %v837_v31 = vpop.eup %836  ;;  %v509_v32 = vmul.f32 %v835_v29, %v435_v52  ;;  %844 = vrcp.f32 %v488_v28 }
 0x202   :  { %v508_v33 = vmul.f32 %v837_v31, %v430_v55  ;;  %766 = vmatpush3.bf16.msra.mxu0 %v765_v30 }
 0x203   :  { %767 = vmatprep.subr.bf16.mxu0 %v851_v39 }
 0x204   :  { %v839_v34 = vpop.eup %838  ;;  %v768_v35 = vpack.c.bf16 %v509_v32, %v508_v33 }
 0x205   :  { %v841_v36 = vpop.eup %840  ;;  %v511_v37 = vmul.f32 %v839_v34, %v445_v60 }
 0x206   :  { %v510_v38 = vmul.f32 %v841_v36, %v440_v62  ;;  %769 = vmatpush3.bf16.msra.mxu0 %v768_v35 }
 0x207   :  { %770 = vmatprep.subr.bf16.mxu0 %v851_v39 }
 0x208   :  { %v843_v40 = vpop.eup %842  ;;  %v771_v41 = vpack.c.bf16 %v511_v37, %v510_v38 }
 0x209   :  { %v513_v42 = vmul.f32 %v843_v40, %v455_v4 }
 0x20a   :  { %772 = vmatpush3.bf16.msra.mxu0 %v771_v41 }
 0x20b   :  { %v845_v43 = vpop.eup %844  ;;  %773 = vmatprep.subr.bf16.mxu0 %v851_v39 }
 0x20c   :  { %v512_v44 = vmul.f32 %v845_v43, %v450_v6 }
 0x20e   :  { %v774_v45 = vpack.c.bf16 %v513_v42, %v512_v44 }
 0x210   :  { %775 = vmatpush3.bf16.msra.mxu0 %v774_v45 }
 0x213   :  { %746 = vmatmul.mubr.msk.f32.vlgmr.msra.gmra.mrb[8].mxu0 %vm328_vm1, %v514_v46 }
 0x2e6   :  { %v590_v48 = vpop.f32.mrb[8].mxu0 }
 0x2e7   :  { %v591_v49 = vadd.f32 %v590_v48, %v519_v47  ;;  %v747_v50 = vpop.f32.mrb[9].mxu0 }
 0x2e9   :  { %v595_v51 = vsel %vm594_vm3, %v591_v49, -inf }
 0x2ea   :  { %v596_v52 = vrot.slane %v595_v51, 4 }
 0x2ec   :  { %v597_v53 = vmax.f32 %v595_v51, %v596_v52 }
 0x2ee   :  { %v598_v54 = vrot.slane %v597_v53, 2 }
 0x2f0   :  { %v599_v39 = vmax.f32 %v597_v53, %v598_v54 }
 0x2f2   :  { %v600_v55 = vrot.slane %v599_v39, 1 }
 0x2f4   :  { %v601_v56 = vmax.f32 %v599_v39, %v600_v55 }
 0x2f6   :  { %v602_v57 = vsub.f32 %v591_v49, %v601_v56 }
 0x2f8   :  { %v603_v58 = vmul.f32 1.442695, %v602_v57 }
 0x2fa   :  { %846 = vpow2.f32 %v603_v58 }
 0x304   :  { %v847_v59 = vpop.eup %846 }
 0x305   :  { %v605_v60 = vsel %vm594_vm3, %v847_v59, 0.0 }
 0x306   :  { %v606_v61 = vrot.slane %v605_v60, 4 }
 0x308   :  { %v607_v62 = vadd.f32 %v606_v61, %v605_v60 }
 0x30a   :  { %v608_v63 = vrot.slane %v607_v62, 2 }
 0x30c   :  { %v609_v0 = vadd.f32 %v608_v63, %v607_v62 }
 0x30e   :  { %v610_v1 = vrot.slane %v609_v0, 1 }
 0x310   :  { %v611_v2 = vadd.f32 %v610_v1, %v609_v0 }
 0x312   :  { %848 = vrcp.f32 %v611_v2 }
 0x31c   :  { %v849_v3 = vpop.eup %848 }
 0x31d   :  { %v613_v4 = vmul.f32 %v849_v3, %v847_v59 }
 0x31f   :  { %614 = vst.msk [vmem:[%s1035_s7] sm:$0xf] %vm594_vm3, %v613_v4 }

</bundles_post_ra>
